<compile_context>
chip_gen: v7x
topology: tpu7x:2x2x1
jax: 0.10.0
libtpu: 0.0.40
codegen_flags: <defaults>
</compile_context>

<pallas_src>
import functools

import jax
import jax.numpy as jnp
from jax import lax
from jax.experimental import pallas as pl
from jax.experimental.pallas import tpu as pltpu


def _dense_block_kernel(x_ref, wpk_ref, o_ref, *,
                        layer_dims, cmax_in, chunk, n_chunks):
    """x_ref: (Cin0, T) f32; wpk_ref: (L, Cmax_out, Cmax_in+1) f32; o_ref: (Co, T)."""
    n_layers = len(layer_dims)

    # Hoist the (tiny) weight loads and bf16 casts out of the chunk loop:
    # one load per grid step, reused for every lane chunk.
    ws, bs = [], []
    for li, (cin, cout) in enumerate(layer_dims):
        slab = wpk_ref[li]                                  # (Cmax_out, Cmax_in+1) f32
        ws.append(slab[:cout, :cin].astype(jnp.bfloat16))   # MXU wants bf16 operands
        bs.append(slab[:cout, cmax_in:cmax_in + 1])         # (cout, 1) f32 bias column

    def chunk_body(c, carry):
        start = pl.multiple_of(c * chunk, chunk)
        h = x_ref[:, pl.ds(start, chunk)]                   # (Cin0, chunk) f32
        for li in range(n_layers):
            h = jnp.dot(ws[li], h.astype(jnp.bfloat16),
                        preferred_element_type=jnp.float32) + bs[li]
            if li < n_layers - 1:                           # final (zero) conv: no act
                h = jnp.maximum(h, 0.0)
        o_ref[:, pl.ds(start, chunk)] = h.astype(o_ref.dtype)
        return carry

    lax.fori_loop(0, n_chunks, chunk_body, 0, unroll=True)


_TILE_CANDIDATES = (8192, 4096, 2048, 1024, 512, 256, 128)


def _choose_spatial_tile(hw, n_batch):
    """Largest lane-dense tile that divides hw and still leaves >=2 grid steps
    (2 TensorCores on v7x); None if hw has no multiple-of-128 divisor."""
    divisors = [c for c in _TILE_CANDIDATES if hw % c == 0]
    if not divisors:
        return None
    for c in divisors:                       # descending: biggest T with >=2 steps
        if n_batch * (hw // c) >= 2:
            return c
    return divisors[-1]                      # single step unavoidable (tiny problem)


def _pack_params(params):
    """Pack all layers into one zero-padded operand: wpk[li,:cout,:cin]=W,
    wpk[li,:cout,cmax_in]=b."""
    layer_dims = tuple((w.shape[1], w.shape[0]) for (w, _) in params)
    cmax_in = max(d[0] for d in layer_dims)
    cmax_out = max(d[1] for d in layer_dims)
    wpk = jnp.zeros((len(params), cmax_out, cmax_in + 1), jnp.float32)
    for li, (w, b) in enumerate(params):
        cout, cin = w.shape
        wpk = wpk.at[li, :cout, :cin].set(w.astype(jnp.float32))
        wpk = wpk.at[li, :cout, cmax_in].set(b.astype(jnp.float32))
    return wpk, layer_dims, cmax_in, cmax_out


def dense_block_forward(x_nchw, params):
    """x_nchw: [N, C, H, W] -> [N, o_channel, H, W] via one fused pallas_call."""
    N, C, H, W = x_nchw.shape
    hw = H * W
    o_channel = params[-1][0].shape[0]
    n_layers = len(params)

    wpk, layer_dims, cmax_in, cmax_out = _pack_params(params)

    # Channels-first view: NCHW -> [N, C, H*W] is free; the large spatial axis
    # becomes the lane dimension, so stores are lane-dense.
    x = x_nchw.reshape(N, C, hw)
    hw_eff = hw
    T = _choose_spatial_tile(hw, N)
    if T is None:
        # TODO(synk): ragged spatial tail (H*W not a multiple of 128) falls back
        # to pad+slice; an in-kernel masked tail store would avoid the extra
        # HBM round trip.
        hw_eff = int(pl.cdiv(hw, 128)) * 128
        x = jnp.pad(x, ((0, 0), (0, 0), (0, hw_eff - hw)))
        T = _choose_spatial_tile(hw_eff, N)

    chunk = min(T, 512)          # bounds the per-chunk f32 live set to ~(20, 512)
    n_chunks = T // chunk
    grid = (N, hw_eff // T)

    kernel = functools.partial(
        _dense_block_kernel,
        layer_dims=layer_dims, cmax_in=cmax_in, chunk=chunk, n_chunks=n_chunks)

    out = pl.pallas_call(
        kernel,
        out_shape=jax.ShapeDtypeStruct((N, o_channel, hw_eff), x_nchw.dtype),
        grid_spec=pltpu.PrefetchScalarGridSpec(
            num_scalar_prefetch=0,
            grid=grid,
            in_specs=[
                pl.BlockSpec((None, C, T), lambda n, s: (n, 0, s)),
                # single packed weight operand, full-block, fetched once
                pl.BlockSpec((n_layers, cmax_out, cmax_in + 1),
                             lambda n, s: (0, 0, 0)),
            ],
            out_specs=pl.BlockSpec((None, o_channel, T), lambda n, s: (n, 0, s)),
        ),
        compiler_params=pltpu.CompilerParams(
            dimension_semantics=("parallel", "parallel"),
        ),
    )(x, wpk)

    if hw_eff != hw:
        out = out[:, :, :hw]
    return out.reshape(N, o_channel, H, W)


def dense_block_reference(x_nchw, params):
    """Pure-JAX f32 reference of the same computation (for validation)."""
    N, C, H, W = x_nchw.shape
    h = x_nchw.reshape(N, C, H * W).astype(jnp.float32)
    n_layers = len(params)
    for li, (w, b) in enumerate(params):
        h = jnp.einsum("oc,ncs->nos", w, h) + b[None, :, None]
        if li < n_layers - 1:
            h = jnp.maximum(h, 0.0)
    return h.reshape(N, params[-1][0].shape[0], H, W).astype(x_nchw.dtype)


def init_dense_block_params(key, i_channel, o_channel, growth_channel, depth):
    """Mirrors DenseBlock.__init__: weights stored as [Cout, Cin] (1x1 conv)."""
    params = []
    channel = i_channel
    for idx in range(depth):
        growth = (idx + 1) * growth_channel // depth - idx * growth_channel // depth
        key, kw, kb = jax.random.split(key, 3)
        w = 0.1 * jax.random.normal(kw, (channel + growth, channel), jnp.float32)
        b = 0.1 * jax.random.normal(kb, (channel + growth,), jnp.float32)
        params.append((w, b))
        channel += growth
    assert channel == i_channel + growth_channel
    # final 1x1 conv: zero-filled weight and bias (as in the PyTorch __init__)
    params.append((jnp.zeros((o_channel, channel), jnp.float32),
                   jnp.zeros((o_channel,), jnp.float32)))
    return params


if __name__ == "__main__":
    key = jax.random.PRNGKey(0)
    key, kx = jax.random.split(key)

    # Small shapes consistent with the module.
    N, i_channel, H, W = 2, 4, 16, 16
    o_channel, growth_channel, depth = 8, 16, 4

    x = jax.random.normal(kx, (N, i_channel, H, W), jnp.float32)
    params = init_dense_block_params(key, i_channel, o_channel,
                                     growth_channel, depth)

    # Module-faithful run: final conv weight/bias are zero-filled -> output == 0
    # (exact even with bf16 operands: 0 * anything accumulates to exactly 0).
    out = dense_block_forward(x, params)
    out = jax.block_until_ready(out)
    assert out.shape == (N, o_channel, H, W), out.shape
    assert bool(jnp.all(out == 0.0))

    # Numerics validation of the fused kernel itself: same chain but with a
    # non-zero final layer, compared against a pure-JAX f32 reference.
    # Tolerance is loosened because the kernel feeds the MXU bf16 operands.
    key, kw, kb = jax.random.split(key, 3)
    w_last = 0.05 * jax.random.normal(
        kw, (o_channel, i_channel + growth_channel), jnp.float32)
    b_last = 0.05 * jax.random.normal(kb, (o_channel,), jnp.float32)
    params_check = params[:-1] + [(w_last, b_last)]
    out_k = jax.block_until_ready(dense_block_forward(x, params_check))
    out_r = dense_block_reference(x, params_check)
    assert jnp.allclose(out_k, out_r, atol=2e-2, rtol=2e-2), (
        float(jnp.max(jnp.abs(out_k - out_r))))

    print("KERNEL_OK")
</pallas_src>

<mosaic_0001>
module attributes {stable_mosaic.version = 11 : i64} {
  func.func @_dense_block_kernel(%arg0: i32, %arg1: i32, %arg2: memref<1x4x256xf32, #tpu.memory_space<vmem>>, %arg3: memref<5x20x21xf32, #tpu.memory_space<vmem>>, %arg4: memref<1x8x256xf32, #tpu.memory_space<vmem>>) attributes {dimension_semantics = [#tpu.dimension_semantics<parallel>, #tpu.dimension_semantics<parallel>], iteration_bounds = array<i64: 2, 1>, scalar_prefetch = 0 : i64, scratch_operands = 0 : i64, tpu.core_type = #tpu.core_type<tc>, window_params = [{transform_indices = @transform_0, window_bounds = array<i64: 1, 4, 256>}, {pipeline_mode = #tpu.pipeline_mode<synchronous>, transform_indices = @transform_1, window_bounds = array<i64: 5, 20, 21>}, {transform_indices = @transform_2, window_bounds = array<i64: 1, 8, 256>}]} {
    %c0 = arith.constant 0 : index
    %c0_0 = arith.constant 0 : index
    %c0_1 = arith.constant 0 : index
    %0 = vector.load %arg3[%c0, %c0_0, %c0_1] : memref<5x20x21xf32, #tpu.memory_space<vmem>>, vector<1x20x21xf32>
    %1 = vector.shape_cast %0 : vector<1x20x21xf32> to vector<20x21xf32>
    %2 = vector.extract_strided_slice %1 {offsets = [0, 0], sizes = [8, 4], strides = [1, 1]} : vector<20x21xf32> to vector<8x4xf32>
    %3 = arith.truncf %2 : vector<8x4xf32> to vector<8x4xbf16>
    %4 = vector.extract_strided_slice %1 {offsets = [0, 20], sizes = [8, 1], strides = [1, 1]} : vector<20x21xf32> to vector<8x1xf32>
    %c1 = arith.constant 1 : index
    %c0_2 = arith.constant 0 : index
    %c0_3 = arith.constant 0 : index
    %5 = vector.load %arg3[%c1, %c0_2, %c0_3] : memref<5x20x21xf32, #tpu.memory_space<vmem>>, vector<1x20x21xf32>
    %6 = vector.shape_cast %5 : vector<1x20x21xf32> to vector<20x21xf32>
    %7 = vector.extract_strided_slice %6 {offsets = [0, 0], sizes = [12, 8], strides = [1, 1]} : vector<20x21xf32> to vector<12x8xf32>
    %8 = arith.truncf %7 : vector<12x8xf32> to vector<12x8xbf16>
    %9 = vector.extract_strided_slice %6 {offsets = [0, 20], sizes = [12, 1], strides = [1, 1]} : vector<20x21xf32> to vector<12x1xf32>
    %c2 = arith.constant 2 : index
    %c0_4 = arith.constant 0 : index
    %c0_5 = arith.constant 0 : index
    %10 = vector.load %arg3[%c2, %c0_4, %c0_5] : memref<5x20x21xf32, #tpu.memory_space<vmem>>, vector<1x20x21xf32>
    %11 = vector.shape_cast %10 : vector<1x20x21xf32> to vector<20x21xf32>
    %12 = vector.extract_strided_slice %11 {offsets = [0, 0], sizes = [16, 12], strides = [1, 1]} : vector<20x21xf32> to vector<16x12xf32>
    %13 = arith.truncf %12 : vector<16x12xf32> to vector<16x12xbf16>
    %14 = vector.extract_strided_slice %11 {offsets = [0, 20], sizes = [16, 1], strides = [1, 1]} : vector<20x21xf32> to vector<16x1xf32>
    %c3 = arith.constant 3 : index
    %c0_6 = arith.constant 0 : index
    %c0_7 = arith.constant 0 : index
    %15 = vector.load %arg3[%c3, %c0_6, %c0_7] : memref<5x20x21xf32, #tpu.memory_space<vmem>>, vector<1x20x21xf32>
    %16 = vector.shape_cast %15 : vector<1x20x21xf32> to vector<20x21xf32>
    %17 = vector.extract_strided_slice %16 {offsets = [0, 0], sizes = [20, 16], strides = [1, 1]} : vector<20x21xf32> to vector<20x16xf32>
    %18 = arith.truncf %17 : vector<20x16xf32> to vector<20x16xbf16>
    %19 = vector.extract_strided_slice %16 {offsets = [0, 20], sizes = [20, 1], strides = [1, 1]} : vector<20x21xf32> to vector<20x1xf32>
    %c4 = arith.constant 4 : index
    %c0_8 = arith.constant 0 : index
    %c0_9 = arith.constant 0 : index
    %20 = vector.load %arg3[%c4, %c0_8, %c0_9] : memref<5x20x21xf32, #tpu.memory_space<vmem>>, vector<1x20x21xf32>
    %21 = vector.shape_cast %20 : vector<1x20x21xf32> to vector<20x21xf32>
    %22 = vector.extract_strided_slice %21 {offsets = [0, 0], sizes = [8, 20], strides = [1, 1]} : vector<20x21xf32> to vector<8x20xf32>
    %23 = arith.truncf %22 : vector<8x20xf32> to vector<8x20xbf16>
    %24 = vector.extract_strided_slice %21 {offsets = [0, 20], sizes = [8, 1], strides = [1, 1]} : vector<20x21xf32> to vector<8x1xf32>
    %c0_i32 = arith.constant 0 : i32
    %c256_i32 = arith.constant 256 : i32
    %25 = arith.muli %c0_i32, %c256_i32 : i32
    %26 = tpu.assume_multiple %25, 256 : i32
    %c0_10 = arith.constant 0 : index
    %c0_11 = arith.constant 0 : index
    %27 = arith.index_cast %26 : i32 to index
    %28 = vector.load %arg2[%c0_10, %c0_11, %27] : memref<1x4x256xf32, #tpu.memory_space<vmem>>, vector<1x4x256xf32>
    %29 = vector.shape_cast %28 : vector<1x4x256xf32> to vector<4x256xf32>
    %30 = arith.truncf %29 : vector<4x256xf32> to vector<4x256xbf16>
    %cst = arith.constant dense<0.000000e+00> : vector<8x256xf32>
    %31 = tpu.matmul %3, %30, %cst {dimension_numbers = #tpu.dot_dimension_numbers<[1], [0], [0], [1], [0, 0, 1, 1], [], []>} : vector<8x4xbf16>, vector<4x256xbf16>, vector<8x256xf32> -> vector<8x256xf32>
    %32 = vector.broadcast %4 : vector<8x1xf32> to vector<8x256xf32>
    %33 = arith.addf %31, %32 : vector<8x256xf32>
    %cst_12 = arith.constant 0.000000e+00 : f32
    %34 = vector.broadcast %cst_12 : f32 to vector<8x256xf32>
    %35 = arith.maximumf %33, %34 : vector<8x256xf32>
    %36 = arith.truncf %35 : vector<8x256xf32> to vector<8x256xbf16>
    %cst_13 = arith.constant dense<0.000000e+00> : vector<12x256xf32>
    %37 = tpu.matmul %8, %36, %cst_13 {dimension_numbers = #tpu.dot_dimension_numbers<[1], [0], [0], [1], [0, 0, 1, 1], [], []>} : vector<12x8xbf16>, vector<8x256xbf16>, vector<12x256xf32> -> vector<12x256xf32>
    %38 = vector.broadcast %9 : vector<12x1xf32> to vector<12x256xf32>
    %39 = arith.addf %37, %38 : vector<12x256xf32>
    %cst_14 = arith.constant 0.000000e+00 : f32
    %40 = vector.broadcast %cst_14 : f32 to vector<12x256xf32>
    %41 = arith.maximumf %39, %40 : vector<12x256xf32>
    %42 = arith.truncf %41 : vector<12x256xf32> to vector<12x256xbf16>
    %cst_15 = arith.constant dense<0.000000e+00> : vector<16x256xf32>
    %43 = tpu.matmul %13, %42, %cst_15 {dimension_numbers = #tpu.dot_dimension_numbers<[1], [0], [0], [1], [0, 0, 1, 1], [], []>} : vector<16x12xbf16>, vector<12x256xbf16>, vector<16x256xf32> -> vector<16x256xf32>
    %44 = vector.broadcast %14 : vector<16x1xf32> to vector<16x256xf32>
    %45 = arith.addf %43, %44 : vector<16x256xf32>
    %cst_16 = arith.constant 0.000000e+00 : f32
    %46 = vector.broadcast %cst_16 : f32 to vector<16x256xf32>
    %47 = arith.maximumf %45, %46 : vector<16x256xf32>
    %48 = arith.truncf %47 : vector<16x256xf32> to vector<16x256xbf16>
    %cst_17 = arith.constant dense<0.000000e+00> : vector<20x256xf32>
    %49 = tpu.matmul %18, %48, %cst_17 {dimension_numbers = #tpu.dot_dimension_numbers<[1], [0], [0], [1], [0, 0, 1, 1], [], []>} : vector<20x16xbf16>, vector<16x256xbf16>, vector<20x256xf32> -> vector<20x256xf32>
    %50 = vector.broadcast %19 : vector<20x1xf32> to vector<20x256xf32>
    %51 = arith.addf %49, %50 : vector<20x256xf32>
    %cst_18 = arith.constant 0.000000e+00 : f32
    %52 = vector.broadcast %cst_18 : f32 to vector<20x256xf32>
    %53 = arith.maximumf %51, %52 : vector<20x256xf32>
    %54 = arith.truncf %53 : vector<20x256xf32> to vector<20x256xbf16>
    %cst_19 = arith.constant dense<0.000000e+00> : vector<8x256xf32>
    %55 = tpu.matmul %23, %54, %cst_19 {dimension_numbers = #tpu.dot_dimension_numbers<[1], [0], [0], [1], [0, 0, 1, 1], [], []>} : vector<8x20xbf16>, vector<20x256xbf16>, vector<8x256xf32> -> vector<8x256xf32>
    %56 = vector.broadcast %24 : vector<8x1xf32> to vector<8x256xf32>
    %57 = arith.addf %55, %56 : vector<8x256xf32>
    %c0_20 = arith.constant 0 : index
    %c0_21 = arith.constant 0 : index
    %58 = arith.index_cast %26 : i32 to index
    %59 = vector.load %arg4[%c0_20, %c0_21, %58] : memref<1x8x256xf32, #tpu.memory_space<vmem>>, vector<1x8x256xf32>
    %60 = vector.shape_cast %59 : vector<1x8x256xf32> to vector<8x256xf32>
    %61 = vector.shape_cast %57 : vector<8x256xf32> to vector<1x8x256xf32>
    tpu.vector_store %arg4[%c0_20, %c0_21, %58], %61 {strides = array<i32>} : memref<1x8x256xf32, #tpu.memory_space<vmem>>, vector<1x8x256xf32>,
    %c1_i32 = arith.constant 1 : i32
    return
  }
  func.func @transform_0(%arg0: i32, %arg1: i32) -> (i32, i32, i32) {
    %c0_i32 = arith.constant 0 : i32
    %c0_i32_0 = arith.constant 0 : i32
    return %arg0, %c0_i32, %arg1 : i32, i32, i32
  }
  func.func @transform_1(%arg0: i32, %arg1: i32) -> (i32, i32, i32) {
    %c0_i32 = arith.constant 0 : i32
    %c0_i32_0 = arith.constant 0 : i32
    %c0_i32_1 = arith.constant 0 : i32
    %c0_i32_2 = arith.constant 0 : i32
    return %c0_i32, %c0_i32_0, %c0_i32_1 : i32, i32, i32
  }
  func.func @transform_2(%arg0: i32, %arg1: i32) -> (i32, i32, i32) {
    %c0_i32 = arith.constant 0 : i32
    %c0_i32_0 = arith.constant 0 : i32
    return %arg0, %c0_i32, %arg1 : i32, i32, i32
  }
}

</mosaic_0001>

<bundles_post_ra>
// kernel: tpu_custom_call.1
= control target key start
LH: loop header
LB: loop body
LE: loop exit
PB: predicated region body
PF: predicated region fallthrough
CT: control target
= control target key end

     0   :  { %7 = vsyncpa [#allocation3], 0  ;;  %s1194_s0 = inlined_call_operand.hbm [shape: f32[2,4,256], index: 0, kind: input, shape index: {}]   ;;  %s1195_s1 = inlined_call_operand.hbm [shape: f32[5,20,21], index: 1, kind: input, shape index: {}]   ;;  %s1196_s2 = inlined_call_operand.hbm [shape: f32[2,8,256], index: 2, kind: output, shape index: {}]  }
   0x1   :  { %9 = vsyncpa [#allocation3 + $0x1], 0 }
   0x2   :  { %10 = vsyncpa [#allocation6], 0 }
   0x3   :  { %11 = vsyncpa [#allocation4], 0 }
   0x4   :  { %13 = vsyncpa [#allocation4 + $0x1], 0  ;;  %s951_s9 = smov 0   ;;  %s953_s10 = smov 0  }
   0x5   :  { %s955_s11 = smov 0   ;;  %s957_s12 = smov 0  }
   0x6   :  { %s959_s13 = smov 0   ;;  %s961_s14 = smov 0  }
   0x7 LB: > { %s674_s15 = sadd.s32 4294967295, %s927_s14   ;;  %s675_s16 = sadd.s32 4294967294, %s927_s14   ;;  %s927_s14 = sphi %s961_s14, %s19_s14   ;;  %s923_s13 = sphi %s959_s13, %s1220_s13   ;;  %s919_s12 = sphi %s957_s12, %s1219_s12   ;;  %s915_s11 = sphi %s955_s11, %s1218_s11   ;;  %s911_s10 = sphi %s953_s10, %s1217_s10   ;;  %s907_s9 = sphi %s951_s9, %s1216_s9  }
   0x8   : > { %p53_p0 = scmp.ne.s32.totalorder %s911_s10, %s907_s9  ;;  %p985_p1 = scmp.eq.s32.totalorder %s674_s15, 0 }
   0x9   : > { %p989_p2 = scmp.eq.s32.totalorder %s674_s15, 1  ;;  %p106_p3 = scmp.eq.s32.totalorder %s675_s16, 1 }
   0xa   : > { %s1201_s17 = scalar_select %p985_p1, 1, 0 }
   0xb   : > { %s1202_s18 = scalar_select %p989_p2, 1, 0 }
   0xc   : > { %p995_p4 = por %p985_p1, %p53_p0  ;;  %p676_p5 = scmp.ge.s32.totalorder %s927_s14, 1 }
   0xd   : > { %p1000_p6 = por %p106_p3, %p53_p0  ;;  %p113_p7 = scmp.lt.s32.totalorder %s927_s14, 3 }
   0xe   : > { %s1203_s19 = scalar_select %p995_p4, 1, 0 }
   0xf   : > { %s1204_s20 = scalar_select %p1000_p6, 1, 0 }
  0x10   : > { %p1005_p8 = pnand %p676_p5, %p113_p7  ;;  %s929_s22 = smov [#allocation5]  }
  0x11   : > { %s125_s23 = sshll.u32 %s929_s22, 4  ;;  %s31_s25 = sadd.s32 1, %s923_s13  ;;  %s126_s23 = int_to_ptr.vmem [resolvable:$true] %s125_s23 }
  0x12   : > { %s1205_s21 = scalar_select %p1005_p8, 1, 0 }
  0x13   : > { %p711_p9 = pneg %p1005_p8  ;;  %s783_s28 = scalar_lea.hbm %s1195_s1, 1920 }
  0x14   : > { %p784_p12 = scmp.ne.s32.totalorder %s1195_s1, %s783_s28  ;;  %p790_p5 = scmp.lt.u32.totalorder %s783_s28, %s1195_s1 }
  0x15   : > { %p1014_p11 = pnand %p711_p9, %p985_p1 }
  0x17   : > { %p785_p13 = pneg %p1014_p11 }
  0x19   : > { %p786_p0 = pnand %p785_p13, %p784_p12 }
  0x1b   : > { %p787_p3 = pneg %p786_p0 }
  0x1d   : > { %p792_p7 = pnand %p790_p5, %p787_p3 }
  0x1f   : > { %795 = shalt.err (!%p792_p7)
}
  0x20   : > { %s796_s5 = scalar_lea.vmem %s126_s23, 1920  ;;  %p804_p1 = scmp.lt.s32.totalorder %s126_s23, %s126_s23 }
  0x21   : > { %p797_p9 = scmp.ne.s32.totalorder %s126_s23, %s796_s5  ;;  %p805_p4 = scmp.lt.s32.totalorder %s796_s5, %s796_s5 }
  0x23   : > { %p799_p10 = pnand %p797_p9, %p785_p13  ;;  %p806_p8 = por %p805_p4, %p804_p1 }
  0x25   : > { %p800_p6 = pneg %p799_p10 }
  0x27   : > { %p807_p2 = pnand %p806_p8, %p800_p6 }
  0x29   : > { %810 = shalt.err (!%p807_p2)
}
  0x2a   : > { %s930_s6 = smov 128   ;;  %s931_s7 = smov 8  }
  0x2b   : > { %714 = dma.hbm_to_vmem [thread:$0]  (!%p1014_p11), %s1195_s1, 1920, %s126_s23, [#allocation6], %s930_s6, %s930_s6, %s931_s7  }
  0x2c   : > { %p33_p1 = scmp.ge.s32.totalorder %s31_s25, 2  ;;  %s40_s16 = sadd.s32 1, %s915_s11 }
  0x2d   : > { %p47_p2 = scmp.ne.s32.totalorder %s915_s11, %s911_s10  ;;  %p48_p4 = scmp.eq.s32.totalorder %s927_s14, 0 }
  0x2e   : > { %s1222_s25 = smov (%p33_p1, %s31_s25), 0  ;;  %p1208_p8 = scmp.ne.s32.totalorder %s1202_s18, 0 }
  0x2f   : > { %p1041_p6 = por %p48_p4, %p47_p2  ;;  %s35_s24 = ssub.s32 %s923_s13, %s1222_s25 }
  0x30   : > { %p1047_p10 = por %p1208_p8, %p47_p2  ;;  %p724_p12 = scmp.lt.s32.totalorder %s927_s14, 2 }
  0x31   : > { %p38_p11 = scmp.eq.s32.totalorder %s35_s24, 0  ;;  %s139_s23 = sand.u32 1, %s915_s11  }
  0x32   : > { %s679_s27 = sshll.u32 %s139_s23, 3  ;;  %s701_s29 = sshll.u32 %s923_s13, 7 }
  0x33   : > { %s1056_s28 = scalar_select %p38_p11, %s915_s11, %s40_s16  }
  0x34   : > { %s1062_s4 = scalar_lea.hbm %s1194_s0, %s701_s29  ;;  %s143_s18 = scalar_lea.vmem [#allocation2], %s679_s27 }
  0x35   : > { %s153_s5 = sshll.u32 %s143_s18, 4  ;;  %p1068_p13 = pnand %p724_p12, %p1041_p6  ;;  %s1064_s5 = int_to_ptr.vmem [resolvable:$true] %s153_s5 }
  0x36   : > { %s140_s7 = scalar_lea.sflag [#allocation3], %s139_s23  ;;  %s811_s8 = scalar_lea.hbm %s1062_s4, 128 }
  0x37   : > { %p812_p0 = scmp.ne.s32.totalorder %s1062_s4, %s811_s8  ;;  %p813_p3 = pneg %p1068_p13 }
  0x38   : > { %s816_s24 = scalar_lea.hbm %s1194_s0, 256  ;;  %p817_p9 = scmp.lt.u32.totalorder %s1062_s4, %s1194_s0 }
  0x39   : > { %p814_p5 = pnand %p813_p3, %p812_p0  ;;  %p818_p1 = scmp.lt.u32.totalorder %s816_s24, %s811_s8 }
  0x3a   : > { %p820_p4 = scmp.lt.u32.totalorder %s811_s8, %s1062_s4 }
  0x3b   : > { %p815_p7 = pneg %p814_p5  ;;  %p819_p2 = por %p818_p1, %p817_p9 }
  0x3d   : > { %p821_p6 = por %p820_p4, %p819_p2 }
  0x3f   : > { %p822_p8 = pnand %p821_p6, %p815_p7 }
  0x41   : > { %825 = shalt.err (!%p822_p8)
}
  0x42   : > { %s826_s23 = scalar_lea.vmem %s1064_s5, 128  ;;  %s932_s29 = smov [#allocation2]  }
  0x43   : > { %p827_p12 = scmp.ne.s32.totalorder %s1064_s5, %s826_s23  ;;  %s831_s30 = sshll.u32 %s932_s29, 4  ;;  %s832_s30 = int_to_ptr.vmem [resolvable:$false] %s831_s30 }
  0x44   : > { %s833_s3 = scalar_lea.vmem %s832_s30, 256  ;;  %p834_p5 = scmp.lt.s32.totalorder %s1064_s5, %s832_s30 }
  0x45   : > { %p829_p11 = pnand %p827_p12, %p813_p3  ;;  %p835_p9 = scmp.lt.s32.totalorder %s833_s3, %s826_s23 }
  0x47   : > { %p830_p0 = pneg %p829_p11  ;;  %p836_p1 = por %p835_p9, %p834_p5 }
  0x49   : > { %p837_p2 = pnand %p836_p1, %p830_p0 }
  0x4b   : > { %840 = shalt.err (!%p837_p2)
}
  0x4c   : > { %718 = dma.hbm_to_vmem [thread:$0]  (!%p1068_p13), %s1062_s4, 128, %s1064_s5, %s140_s7  }
  0x4d   : > { %p1211_p7 = scmp.ne.s32.totalorder %s1205_s21, 0 }
  0x4e   : > { %s1100_s18 = sand.u32 (!%p1211_p7), 1, %s911_s10   ;;  %p1212_p3 = scmp.ne.s32.totalorder (!%p1211_p7), %s1203_s19, 0 }
  0x4f   : > { %162 = sbr.rel (%p1211_p7) target bundleno = 1232 (0x4d0), region = 28  ;;  %s683_s8 = sshll.u32 (!%p1211_p7), %s1100_s18, 3 }
  0x50   : > { %s165_s15 = scalar_lea.sflag (!%p1211_p7), [#allocation3], %s1100_s18  ;;  %s168_s16 = scalar_lea.vmem (!%p1211_p7), [#allocation2], %s683_s8 }
  0x56   : > { %894 = dma.done.wait (%p1212_p3), %s165_s15, 128  }
  0x57   : > { %896 = vsyncadd (%p1212_p3), %s165_s15, 4294967168  ;;  %p1213_p4 = scmp.ne.s32.totalorder %s1201_s17, 0 }
  0x59   : > { %898 = dma.done.wait (%p1213_p4), [#allocation6], 1920  }
  0x5a   : > { %900 = vsyncadd (%p1213_p4), [#allocation6], 4294965376  ;;  %v933_v0 = vmov 0   ;;  %v934_v1 = vmov 20   ;;  %v215_v2 = vld [vmem:[%s168_s16] sm:$0xff]  ;;  %vm230_vm0 = vcmask 1041408  }
  0x5b   : > { %269 = vmatprep.mubr.bf16.mxu0 %v933_v0  ;;  %780 = vset.pattern.permute.xlu0 %v934_v1  ;;  %v196_v3 = vld [vmem:[#allocation5] sm:$0xff]  ;;  %v217_v4 = vcombine.high %v215_v2, %v215_v2  ;;  %v219_v5 = vpack.c.bf16 %v215_v2, %v215_v2  ;;  %v199_v6 = vld [vmem:[#allocation5 + $0x18] sm:$0xff]  ;;  %vm226_vm1 = vcmask 31744   ;;  %v1116_v13 = vld [vmem:[#allocation5 + $0x50] sm:$0xff]  ;;  %vm296_vm2 = vcmask 1043456   ;;  %s685_s17 = sshll.u32 %s1100_s18, 4 }
  0x5c   : > { %335 = vmatprep.mubr.bf16.mxu1 %v933_v0  ;;  %781 = vset.pattern.permute.xlu1 %v934_v1  ;;  %v200_v7 = vld [vmem:[#allocation5 + $0x20] sm:$0xff]  ;;  %v197_v11 = vpack.c.bf16 %v196_v3, %v196_v3  ;;  %v204_v12 = vld [vmem:[#allocation5 + $0x38] sm:$0xff]  ;;  %v203_v15 = vld [vmem:[#allocation5 + $0x30] sm:$0xff]  ;;  %vm292_vm3 = vcmask 64512   ;;  %vm366_vm4 = vcmask 1045504   ;;  %vm362_vm5 = vcmask 97280  }
  0x5d   : > { %223 = vperm.xlu0 %780, %v196_v3   ;;  %v201_v8 = vpack.c.bf16 %v200_v7, %v199_v6  ;;  %289 = vperm.xlu1 %781, %v200_v7   ;;  %v220_v9 = vpack.c.bf16 %v217_v4, %v217_v4  ;;  %v232_v10 = vsel %vm230_vm0, %v219_v5, 0  ;;  %v1120_v14 = vld [vmem:[#allocation5 + $0x60] sm:$0xff]  ;;  %v1123_v16 = vld [vmem:[#allocation5 + $0x48] sm:$0xff]  ;;  %v1126_v17 = vld [vmem:[#allocation5 + $0x58] sm:$0xf]  ;;  %v205_v47 = vpack.c.bf16 %v204_v12, %v203_v15  ;;  %s702_s19 = sshll.u32 %s919_s12, 8 }
  0x5e   : > { %v210_v1 = vpack.c.bf16 %v1116_v13, %v1123_v16  ;;  %vm437_vm6 = vcmask 130048   ;;  %v211_v2 = vpack.c.bf16 %v1126_v17, %v1126_v17  ;;  %vm510_vm7 = vcmask 162816   ;;  %s192_s21 = scalar_lea.vmem [#allocation7], %s685_s17  ;;  %s1145_s7 = scalar_lea.hbm %s1196_s2, %s702_s19 }
  0x5f   : > { %686 = vmatprep.subr.msk.bf16.mxu0 %vm230_vm0, %v220_v9  ;;  %s580_s4 = sshll.u32 %s192_s21, 4  ;;  %s564_s12 = scalar_lea.sflag [#allocation4], %s1100_s18  ;;  %s1147_s4 = int_to_ptr.vmem [resolvable:$true] %s580_s4 }
  0x60   : > { %238 = vmatpush1.bf16.msra.mxu0 %v232_v10  ;;  %s841_s24 = scalar_lea.vmem %s1147_s4, 256  ;;  %s935_s22 = smov [#allocation7]  }
  0x61   : > { %284 = vperm.xlu0 %780, %v199_v6   ;;  %354 = vperm.xlu1 %781, %v203_v15   ;;  %p842_p13 = scmp.ne.s32.totalorder %s1147_s4, %s841_s24  ;;  %s845_s27 = sshll.u32 %s935_s22, 4  ;;  %s846_s27 = int_to_ptr.vmem [resolvable:$false] %s845_s27 }
  0x62   : > { %s847_s23 = scalar_lea.vmem %s846_s27, 512  ;;  %p848_p12 = scmp.lt.s32.totalorder %s1147_s4, %s846_s27 }
  0x63   : > { %687 = vmatmul.mubr.msk.bf16.vlgmr.msra.gmra.mrb[0].mxu0 %vm226_vm1, %v197_v11  ;;  %p843_p6 = pnand %p842_p13, %p1047_p10  ;;  %p849_p11 = scmp.lt.s32.totalorder %s847_s23, %s841_s24 }
  0x64   : > { %405 = vmatprep.mubr.bf16.mxu0 %v933_v0 }
  0x65   : > { %359 = vperm.xlu0 %780, %v204_v12   ;;  %424 = vperm.xlu1 %781, %v1123_v16   ;;  %p844_p8 = pneg %p843_p6  ;;  %p850_p0 = por %p849_p11, %p848_p12 }
  0x67   : > { %p851_p5 = pnand %p850_p0, %p844_p8 }
  0x69   : > { %429 = vperm.xlu0 %780, %v1116_v13   ;;  %434 = vperm.xlu1 %781, %v1126_v17  }
  0x6d   : > { %507 = vperm.xlu0 %780, %v1120_v14  }
  0xdc   : > { %v224_v18 = vpop.permute.xlu0 %223  ;;  %v290_v34 = vpop.permute.xlu1 %289 }
  0xe0   : > { %v285_v30 = vpop.permute.xlu0 %284  ;;  %v355_v48 = vpop.permute.xlu1 %354 }
  0xe4   : > { %v360_v52 = vpop.permute.xlu0 %359  ;;  %v425_v3 = vpop.permute.xlu1 %424 }
  0xe8   : > { %v430_v7 = vpop.permute.xlu0 %429 }
 0x136   : > { %v271_v19 = vpop.f32.mrb[0].mxu0 }
 0x137   : > { %v272_v20 = vadd.f32 %v271_v19, %v224_v18  ;;  %v273_v21 = vpop.f32.mrb[1].mxu0 }
 0x138   : > { %v274_v22 = vadd.f32 %v273_v21, %v224_v18  ;;  %v275_v23 = vpop.f32.mrb[2].mxu0 }
 0x139   : > { %v278_v24 = vmax.f32 %v272_v20, 0.0  ;;  %v276_v25 = vpop.f32.mrb[3].mxu0 }
 0x13a   : > { %v279_v26 = vmax.f32 %v274_v22, 0.0 }
 0x13b   : > { %v280_v27 = vpack.c.bf16 %v278_v24, %v278_v24 }
 0x13c   : > { %v281_v28 = vpack.c.bf16 %v279_v26, %v279_v26 }
 0x13d   : > { %v298_v29 = vsel %vm296_vm2, %v280_v27, 0 }
 0x13e   : > { %688 = vmatprep.subr.msk.bf16.mxu1 %vm296_vm2, %v281_v28 }
 0x13f   : > { %304 = vmatpush1.bf16.msra.mxu1 %v298_v29 }
 0x142   : > { %689 = vmatmul.mubr.msk.bf16.vlgmr.msra.gmra.mrb[0].mxu1 %vm292_vm3, %v201_v8 }
 0x143   : > { %476 = vmatprep.mubr.bf16.mxu1 %v933_v0 }
 0x215   : > { %v337_v31 = vpop.f32.mrb[0].mxu1 }
 0x216   : > { %v338_v32 = vadd.f32 %v337_v31, %v285_v30  ;;  %v339_v33 = vpop.f32.mrb[1].mxu1  ;;  %v214_v31 = vpack.c.bf16 %v1120_v14, %v1120_v14 }
 0x217   : > { %v340_v35 = vadd.f32 %v339_v33, %v285_v30  ;;  %v341_v36 = vpop.f32.mrb[2].mxu1 }
 0x218   : > { %v342_v37 = vadd.f32 %v341_v36, %v290_v34  ;;  %v343_v38 = vpop.f32.mrb[3].mxu1  ;;  %v346_v40 = vmax.f32 %v338_v32, 0.0  ;;  %v508_v32 = vpop.permute.xlu0 %507 }
 0x219   : > { %v344_v39 = vadd.f32 %v343_v38, %v290_v34  ;;  %v347_v42 = vmax.f32 %v340_v35, 0.0 }
 0x21a   : > { %v348_v41 = vmax.f32 %v342_v37, 0.0 }
 0x21b   : > { %v349_v43 = vmax.f32 %v344_v39, 0.0 }
 0x21c   : > { %v350_v44 = vpack.c.bf16 %v348_v41, %v346_v40 }
 0x21d   : > { %v351_v45 = vpack.c.bf16 %v349_v43, %v347_v42 }
 0x21e   : > { %v368_v46 = vsel %vm366_vm4, %v350_v44, 0 }
 0x21f   : > { %690 = vmatprep.subr.msk.bf16.mxu0 %vm366_vm4, %v351_v45 }
 0x220   : > { %374 = vmatpush1.bf16.msra.mxu0 %v368_v46 }
 0x223   : > { %691 = vmatmul.mubr.msk.bf16.vlgmr.msra.gmra.mrb[4].mxu0 %vm362_vm5, %v205_v47 }
 0x224   : > { %552 = vmatprep.mubr.bf16.mxu0 %v933_v0 }
 0x2f6   : > { %v407_v49 = vpop.f32.mrb[4].mxu0 }
 0x2f7   : > { %v408_v50 = vadd.f32 %v407_v49, %v355_v48  ;;  %v409_v51 = vpop.f32.mrb[5].mxu0 }
 0x2f8   : > { %v410_v53 = vadd.f32 %v409_v51, %v355_v48  ;;  %v411_v54 = vpop.f32.mrb[6].mxu0 }
 0x2f9   : > { %v412_v55 = vadd.f32 %v411_v54, %v360_v52  ;;  %v413_v56 = vpop.f32.mrb[7].mxu0  ;;  %v416_v58 = vmax.f32 %v408_v50, 0.0 }
 0x2fa   : > { %v414_v57 = vadd.f32 %v413_v56, %v360_v52  ;;  %v417_v60 = vmax.f32 %v410_v53, 0.0 }
 0x2fb   : > { %v418_v59 = vmax.f32 %v412_v55, 0.0 }
 0x2fc   : > { %v419_v61 = vmax.f32 %v414_v57, 0.0 }
 0x2fd   : > { %v420_v62 = vpack.c.bf16 %v418_v59, %v416_v58 }
 0x2fe   : > { %v421_v63 = vpack.c.bf16 %v419_v61, %v417_v60 }
 0x300   : > { %444 = vmatprep.subr.bf16.mxu1 %v421_v63 }
 0x301   : > { %445 = vmatpush1.bf16.msra.mxu1 %v420_v62 }
 0x304   : > { %692 = vmatmul.mubr.msk.bf16.vlgmr.msra.gmra.mrb[4].mxu1 %vm437_vm6, %v210_v1 }
 0x305   : > { %486 = vmatprep.mubr.bf16.mxu1 %v933_v0  ;;  %v435_v0 = vpop.permute.xlu1 %434 }
 0x30c   : > { %693 = vmatmul.mubr.msk.bf16.gmra.mrb[8].mxu1 %vm437_vm6, %v211_v2 }
 0x3d7   : > { %v478_v4 = vpop.f32.mrb[4].mxu1 }
 0x3d8   : > { %v479_v5 = vadd.f32 %v478_v4, %v425_v3  ;;  %v480_v6 = vpop.f32.mrb[5].mxu1 }
 0x3d9   : > { %v481_v8 = vadd.f32 %v480_v6, %v425_v3  ;;  %v482_v9 = vpop.f32.mrb[6].mxu1 }
 0x3da   : > { %v483_v10 = vadd.f32 %v482_v9, %v430_v7  ;;  %v484_v11 = vpop.f32.mrb[7].mxu1  ;;  %v495_v13 = vmax.f32 %v479_v5, 0.0 }
 0x3db   : > { %v485_v12 = vadd.f32 %v484_v11, %v430_v7  ;;  %v496_v16 = vmax.f32 %v481_v8, 0.0 }
 0x3dc   : > { %v497_v15 = vmax.f32 %v483_v10, 0.0 }
 0x3dd   : > { %v498_v18 = vmax.f32 %v485_v12, 0.0 }
 0x3de   : > { %v501_v19 = vpack.c.bf16 %v497_v15, %v495_v13 }
 0x3df   : > { %v502_v20 = vpack.c.bf16 %v498_v18, %v496_v16  ;;  %v488_v21 = vpop.f32.mrb[8].mxu1 }
 0x3e0   : > { %v489_v17 = vadd.f32 %v488_v21, %v435_v0  ;;  %v490_v22 = vpop.f32.mrb[9].mxu1 }
 0x3e1   : > { %v491_v23 = vadd.f32 %v490_v22, %v435_v0  ;;  %520 = vmatprep.subr.bf16.mxu0 %v502_v20  ;;  %v492_v24 = vpop.f32.mrb[10].mxu1 }
 0x3e2   : > { %v499_v25 = vmax.f32 %v489_v17, 0.0  ;;  %521 = vmatpush1.bf16.msra.mxu0 %v501_v19  ;;  %v493_v26 = vpop.f32.mrb[11].mxu1 }
 0x3e3   : > { %v500_v27 = vmax.f32 %v491_v23, 0.0 }
 0x3e4   : > { %v503_v28 = vpack.c.bf16 %v499_v25, %v499_v25 }
 0x3e5   : > { %v504_v29 = vpack.c.bf16 %v500_v27, %v500_v27 }
 0x3e6   : > { %v515_v30 = vsel %vm230_vm0, %v503_v28, 0 }
 0x3e7   : > { %694 = vmatprep.subr.msk.bf16.mxu0 %vm230_vm0, %v504_v29 }
 0x3e8   : > { %523 = vmatpush1.bf16.msra.mxu0 %v515_v30 }
 0x3eb   : > { %695 = vmatmul.mubr.msk.bf16.vlgmr.msra.gmra.mrb[8].mxu0 %vm510_vm7, %v214_v31 }
 0x4be   : > { %v554_v33 = vpop.f32.mrb[8].mxu0 }
 0x4bf   : > { %v555_v34 = vadd.f32 %v554_v33, %v508_v32  ;;  %v556_v35 = vpop.f32.mrb[9].mxu0 }
 0x4c0   : > { %v557_v36 = vadd.f32 %v556_v35, %v508_v32  ;;  %v558_v37 = vpop.f32.mrb[10].mxu0 }
 0x4c1   : > { %561 = vst [vmem:[%s192_s21] sm:$0xff] %v555_v34  ;;  %v559_v14 = vpop.f32.mrb[11].mxu0 }
 0x4c2   : > { %562 = vst [vmem:[%s192_s21 + $0x8] sm:$0xff] %v557_v36 }
 0x4c3   : > { %854 = shalt.err (!%p851_p5)
}
 0x4c4   : > { %s855_s29 = scalar_lea.hbm %s1145_s7, 256  ;;  %s859_s18 = scalar_lea.hbm %s1196_s2, 512 }
 0x4c5   : > { %p856_p9 = scmp.ne.s32.totalorder %s1145_s7, %s855_s29  ;;  %p860_p7 = scmp.lt.u32.totalorder %s1145_s7, %s1196_s2 }
 0x4c6   : > { %p861_p3 = scmp.lt.u32.totalorder %s859_s18, %s855_s29  ;;  %p863_p13 = scmp.lt.u32.totalorder %s855_s29, %s1145_s7 }
 0x4c7   : > { %p857_p1 = pnand %p856_p9, %p1047_p10 }
 0x4c8   : > { %p862_p4 = por %p861_p3, %p860_p7 }
 0x4c9   : > { %p858_p2 = pneg %p857_p1 }
 0x4ca   : > { %p864_p6 = por %p863_p13, %p862_p4 }
 0x4cc   : > { %p865_p8 = pnand %p864_p6, %p858_p2 }
 0x4ce   : > { %868 = shalt.err (!%p865_p8)
}
 0x4cf   : > { %709 = dma.vmem_to_hbm [thread:$0]  (%p1047_p10), %s1147_s4, 256, %s1145_s7, %s564_s12  }
 0x4d0 PF: > { %s592_s16 = sand.u32 1, %s907_s9   ;;  %p1214_p12 = scmp.ne.s32.totalorder %s1204_s20, 0 }
 0x4d1   : > { %p1215_p11 = scmp.ge.s32.totalorder %s927_s14, 2  ;;  %s593_s17 = scalar_lea.sflag [#allocation4], %s592_s16 }
 0x4d3   : > { %p720_p0 = pnand %p1215_p11, %p1214_p12 }
 0x4d5   : > { %902 = dma.done.wait (!%p720_p0), %s593_s17, 256  }
 0x4d6   : > { %904 = vsyncadd (!%p720_p0), %s593_s17, 4294967040  ;;  %s19_s14 = sadd.s32 1, %s927_s14   ;;  %s1216_s9 = smov %s911_s10 }
 0x4d7   : > { %p16_p5 = scmp.ge.s32.totalorder %s19_s14, 4   ;;  %s1217_s10 = smov %s915_s11 }
 0x4d8   : > { %s1218_s11 = smov %s1056_s28  ;;  %s1219_s12 = smov %s923_s13 }
 0x4d9   : > { %s1220_s13 = smov %s1222_s25  ;;  %18 = sbr.rel (!%p16_p5) target bundleno = 7 (0x7), region = 81 }
 0x4e0   :  { %598 = vsyncpa [#allocation3], 1 }
 0x4e1   :  { %600 = vsyncpa [#allocation3 + $0x1], 1 }
 0x4e2   :  { %601 = vsyncpa [#allocation6], 1 }
 0x4e3   :  { %602 = vsyncpa [#allocation4], 1 }
 0x4e4   :  { %604 = vsyncpa [#allocation4 + $0x1], 1 }

</bundles_post_ra>
